<compile_context>
chip_gen: v7x
topology: tpu7x:2x2x1
jax: 0.10.0
libtpu: 0.0.40
codegen_flags: <defaults>
</compile_context>

<pallas_src>
import functools
import math

import jax
import jax.numpy as jnp
from jax import lax
from jax.experimental import pallas as pl
from jax.experimental.pallas import tpu as pltpu

STD = 0.05
_TWO_PI = 2.0 * math.pi


def _hash_u32(x):
    """lowbias32 integer hash: good avalanche, fixed shifts only (VPU friendly)."""
    x = x ^ (x >> 16)
    x = x * jnp.uint32(0x7FEB352D)
    x = x ^ (x >> 15)
    x = x * jnp.uint32(0x846CA68B)
    x = x ^ (x >> 16)
    return x


def _lambda_noise_kernel(seed_ref, x_ref, o_ref, *, std):
    block_rows, feat_pad = x_ref.shape
    half = feat_pad // 2
    pid = pl.program_id(0)

    # Unique u32 counter per (global row, column, stream).  The seed is hashed
    # in so different seeds decorrelate; the tile id makes counters globally
    # unique so every grid step produces distinct noise.
    seed_mix = _hash_u32(seed_ref[0].astype(jnp.uint32))
    row = lax.broadcasted_iota(jnp.uint32, (block_rows, half), 0)
    col = lax.broadcasted_iota(jnp.uint32, (block_rows, half), 1)
    grow = row + pid.astype(jnp.uint32) * jnp.uint32(block_rows)
    ctr0 = grow * jnp.uint32(feat_pad) + col + seed_mix
    ctr1 = ctr0 + jnp.uint32(half)

    bits1 = _hash_u32(ctr0)
    bits2 = _hash_u32(ctr1)

    # Exponent-bit uniforms: 23 random mantissa bits under exponent 0 gives a
    # float in [1, 2).  u1 in (0, 1] (log-safe, no max() guard), u2 in [0, 1).
    one_exp = jnp.uint32(0x3F800000)
    f1 = lax.bitcast_convert_type((bits1 >> 9) | one_exp, jnp.float32)
    f2 = lax.bitcast_convert_type((bits2 >> 9) | one_exp, jnp.float32)
    u1 = jnp.float32(2.0) - f1
    u2 = f2 - jnp.float32(1.0)

    # Box-Muller, keeping BOTH branches (halves log/sqrt per output element).
    r = jnp.sqrt(jnp.float32(-2.0) * jnp.log(u1))
    theta = jnp.float32(_TWO_PI) * u2
    z = jnp.concatenate([r * jnp.cos(theta), r * jnp.sin(theta)], axis=-1)

    o_ref[...] = (x_ref[...].astype(jnp.float32)
                  + jnp.float32(std) * z).astype(o_ref.dtype)


def _round_up(v, m):
    return ((v + m - 1) // m) * m


def lambda_gaussian_noise(x, seed, std=STD):
    """y = Lambda(func)(x) with func(x) = x + N(0, std) noise."""
    orig_shape = x.shape
    n = int(orig_shape[0])
    feat = 1
    for d in orig_shape[1:]:
        feat *= int(d)
    x2d = x.reshape(n, feat)

    # Lane-dense, 256-aligned feature axis: unmasked stores and 128-aligned
    # Box-Muller halves.
    feat_pad = _round_up(feat, 256)

    # Row tile: multiple of 8 sublanes, capped so in+out double-buffering stays
    # a few MiB (comfortable under v7x's 32 MiB scoped-VMEM default).
    itemsize = jnp.dtype(x.dtype).itemsize
    rows_by_vmem = max(8, ((2 * 1024 * 1024) // (feat_pad * itemsize)) // 8 * 8)
    block_rows = min(_round_up(n, 8), 512, rows_by_vmem)
    n_pad = _round_up(n, block_rows)

    x2d = jnp.pad(x2d, ((0, n_pad - n), (0, feat_pad - feat)))
    seed_arr = jnp.asarray([seed], dtype=jnp.int32)

    out = pl.pallas_call(
        functools.partial(_lambda_noise_kernel, std=float(std)),
        grid=(n_pad // block_rows,),
        out_shape=jax.ShapeDtypeStruct((n_pad, feat_pad), x2d.dtype),
        in_specs=[
            pl.BlockSpec(memory_space=pltpu.MemorySpace.SMEM),       # seed
            pl.BlockSpec((block_rows, feat_pad), lambda i: (i, 0)),  # x tile
        ],
        out_specs=pl.BlockSpec((block_rows, feat_pad), lambda i: (i, 0)),
        compiler_params=pltpu.CompilerParams(
            dimension_semantics=("parallel",)),
    )(seed_arr, x2d)

    return out[:n, :feat].reshape(orig_shape)


if __name__ == "__main__":
    key = jax.random.PRNGKey(0)
    # Small shapes consistent with the module's (100, 1, 28, 28) buffer usage:
    # batch=2, channels=1, spatial=28.
    x = jax.random.normal(key, (2, 1, 28, 28), dtype=jnp.float32)

    y = jax.block_until_ready(lambda_gaussian_noise(x, seed=0, std=STD))

    assert y.shape == x.shape and y.dtype == x.dtype
    diff = y - x
    # Noise is N(0, 0.05): small but nonzero, roughly the right scale.
    assert float(jnp.max(jnp.abs(diff))) < 0.5
    d_std = float(jnp.std(diff))
    assert 0.03 < d_std < 0.07, d_std
    assert abs(float(jnp.mean(diff))) < 0.01

    print("KERNEL_OK")
</pallas_src>

<mosaic_0001>
module attributes {stable_mosaic.version = 11 : i64} {
  func.func @_lambda_noise_kernel(%arg0: i32, %arg1: memref<1xi32, #tpu.memory_space<smem>>, %arg2: memref<8x1024xf32, #tpu.memory_space<vmem>>, %arg3: memref<8x1024xf32, #tpu.memory_space<vmem>>) attributes {dimension_semantics = [#tpu.dimension_semantics<parallel>], iteration_bounds = array<i64: 1>, scalar_prefetch = 0 : i64, scratch_operands = 0 : i64, tpu.core_type = #tpu.core_type<tc>, window_params = [{transform_indices = @transform_0, window_bounds = array<i64: 1>}, {transform_indices = @transform_1, window_bounds = array<i64: 8, 1024>}, {transform_indices = @transform_2, window_bounds = array<i64: 8, 1024>}]} {
    %c0 = arith.constant 0 : index
    %0 = memref.load %arg1[%c0] : memref<1xi32, #tpu.memory_space<smem>>
    %c16_i32 = arith.constant 16 : i32
    %1 = arith.shrui %0, %c16_i32 : i32
    %2 = arith.xori %0, %1 : i32
    %c2146121005_i32 = arith.constant 2146121005 : i32
    %3 = arith.muli %2, %c2146121005_i32 : i32
    %c15_i32 = arith.constant 15 : i32
    %4 = arith.shrui %3, %c15_i32 : i32
    %5 = arith.xori %3, %4 : i32
    %c-2073254261_i32 = arith.constant -2073254261 : i32
    %6 = arith.muli %5, %c-2073254261_i32 : i32
    %c16_i32_0 = arith.constant 16 : i32
    %7 = arith.shrui %6, %c16_i32_0 : i32
    %8 = arith.xori %6, %7 : i32
    %9 = tpu.iota {dimensions = array<i32: 0>} : vector<8x512xi32>
    %10 = tpu.iota {dimensions = array<i32: 1>} : vector<8x512xi32>
    %c8_i32 = arith.constant 8 : i32
    %11 = arith.muli %arg0, %c8_i32 : i32
    %12 = vector.broadcast %11 : i32 to vector<8x512xi32>
    %13 = arith.addi %9, %12 : vector<8x512xi32>
    %c1024_i32 = arith.constant 1024 : i32
    %14 = vector.broadcast %c1024_i32 : i32 to vector<8x512xi32>
    %15 = arith.muli %13, %14 : vector<8x512xi32>
    %16 = arith.addi %15, %10 : vector<8x512xi32>
    %17 = vector.broadcast %8 : i32 to vector<8x512xi32>
    %18 = arith.addi %16, %17 : vector<8x512xi32>
    %c512_i32 = arith.constant 512 : i32
    %19 = vector.broadcast %c512_i32 : i32 to vector<8x512xi32>
    %20 = arith.addi %18, %19 : vector<8x512xi32>
    %c16_i32_1 = arith.constant 16 : i32
    %21 = vector.broadcast %c16_i32_1 : i32 to vector<8x512xi32>
    %22 = arith.shrui %18, %21 : vector<8x512xi32>
    %23 = arith.xori %18, %22 : vector<8x512xi32>
    %c2146121005_i32_2 = arith.constant 2146121005 : i32
    %24 = vector.broadcast %c2146121005_i32_2 : i32 to vector<8x512xi32>
    %25 = arith.muli %23, %24 : vector<8x512xi32>
    %c15_i32_3 = arith.constant 15 : i32
    %26 = vector.broadcast %c15_i32_3 : i32 to vector<8x512xi32>
    %27 = arith.shrui %25, %26 : vector<8x512xi32>
    %28 = arith.xori %25, %27 : vector<8x512xi32>
    %c-2073254261_i32_4 = arith.constant -2073254261 : i32
    %29 = vector.broadcast %c-2073254261_i32_4 : i32 to vector<8x512xi32>
    %30 = arith.muli %28, %29 : vector<8x512xi32>
    %c16_i32_5 = arith.constant 16 : i32
    %31 = vector.broadcast %c16_i32_5 : i32 to vector<8x512xi32>
    %32 = arith.shrui %30, %31 : vector<8x512xi32>
    %33 = arith.xori %30, %32 : vector<8x512xi32>
    %c16_i32_6 = arith.constant 16 : i32
    %34 = vector.broadcast %c16_i32_6 : i32 to vector<8x512xi32>
    %35 = arith.shrui %20, %34 : vector<8x512xi32>
    %36 = arith.xori %20, %35 : vector<8x512xi32>
    %c2146121005_i32_7 = arith.constant 2146121005 : i32
    %37 = vector.broadcast %c2146121005_i32_7 : i32 to vector<8x512xi32>
    %38 = arith.muli %36, %37 : vector<8x512xi32>
    %c15_i32_8 = arith.constant 15 : i32
    %39 = vector.broadcast %c15_i32_8 : i32 to vector<8x512xi32>
    %40 = arith.shrui %38, %39 : vector<8x512xi32>
    %41 = arith.xori %38, %40 : vector<8x512xi32>
    %c-2073254261_i32_9 = arith.constant -2073254261 : i32
    %42 = vector.broadcast %c-2073254261_i32_9 : i32 to vector<8x512xi32>
    %43 = arith.muli %41, %42 : vector<8x512xi32>
    %c16_i32_10 = arith.constant 16 : i32
    %44 = vector.broadcast %c16_i32_10 : i32 to vector<8x512xi32>
    %45 = arith.shrui %43, %44 : vector<8x512xi32>
    %46 = arith.xori %43, %45 : vector<8x512xi32>
    %c9_i32 = arith.constant 9 : i32
    %47 = vector.broadcast %c9_i32 : i32 to vector<8x512xi32>
    %48 = arith.shrui %33, %47 : vector<8x512xi32>
    %c1065353216_i32 = arith.constant 1065353216 : i32
    %49 = vector.broadcast %c1065353216_i32 : i32 to vector<8x512xi32>
    %50 = arith.ori %48, %49 : vector<8x512xi32>
    %51 = tpu.bitcast %50 : vector<8x512xi32> -> vector<8x512xf32>
    %c9_i32_11 = arith.constant 9 : i32
    %52 = vector.broadcast %c9_i32_11 : i32 to vector<8x512xi32>
    %53 = arith.shrui %46, %52 : vector<8x512xi32>
    %c1065353216_i32_12 = arith.constant 1065353216 : i32
    %54 = vector.broadcast %c1065353216_i32_12 : i32 to vector<8x512xi32>
    %55 = arith.ori %53, %54 : vector<8x512xi32>
    %56 = tpu.bitcast %55 : vector<8x512xi32> -> vector<8x512xf32>
    %cst = arith.constant 2.000000e+00 : f32
    %57 = vector.broadcast %cst : f32 to vector<8x512xf32>
    %58 = arith.subf %57, %51 : vector<8x512xf32>
    %cst_13 = arith.constant 1.000000e+00 : f32
    %59 = vector.broadcast %cst_13 : f32 to vector<8x512xf32>
    %60 = arith.subf %56, %59 : vector<8x512xf32>
    %61 = math.log %58 : vector<8x512xf32>
    %cst_14 = arith.constant -2.000000e+00 : f32
    %62 = vector.broadcast %cst_14 : f32 to vector<8x512xf32>
    %63 = arith.mulf %62, %61 : vector<8x512xf32>
    %64 = math.sqrt %63 : vector<8x512xf32>
    %cst_15 = arith.constant 6.28318548 : f32
    %65 = vector.broadcast %cst_15 : f32 to vector<8x512xf32>
    %66 = arith.mulf %65, %60 : vector<8x512xf32>
    %67 = math.cos %66 : vector<8x512xf32>
    %68 = arith.mulf %64, %67 : vector<8x512xf32>
    %69 = math.sin %66 : vector<8x512xf32>
    %70 = arith.mulf %64, %69 : vector<8x512xf32>
    %71 = tpu.concatenate %68, %70 in 1 : vector<8x512xf32>, vector<8x512xf32> -> vector<8x1024xf32>
    %c0_16 = arith.constant 0 : index
    %c0_17 = arith.constant 0 : index
    %72 = vector.load %arg2[%c0_16, %c0_17] : memref<8x1024xf32, #tpu.memory_space<vmem>>, vector<8x1024xf32>
    %cst_18 = arith.constant 5.000000e-02 : f32
    %73 = vector.broadcast %cst_18 : f32 to vector<8x1024xf32>
    %74 = arith.mulf %73, %71 : vector<8x1024xf32>
    %75 = arith.addf %72, %74 : vector<8x1024xf32>
    %c0_19 = arith.constant 0 : index
    %c0_20 = arith.constant 0 : index
    %76 = vector.load %arg3[%c0_19, %c0_20] : memref<8x1024xf32, #tpu.memory_space<vmem>>, vector<8x1024xf32>
    tpu.vector_store %arg3[%c0_19, %c0_20], %75 {strides = array<i32>} : memref<8x1024xf32, #tpu.memory_space<vmem>>, vector<8x1024xf32>,
    return
  }
  func.func @transform_0(%arg0: i32) -> i32 {
    %c0_i32 = arith.constant 0 : i32
    %c0_i32_0 = arith.constant 0 : i32
    return %c0_i32 : i32
  }
  func.func @transform_1(%arg0: i32) -> (i32, i32) {
    %c0_i32 = arith.constant 0 : i32
    %c0_i32_0 = arith.constant 0 : i32
    return %arg0, %c0_i32 : i32, i32
  }
  func.func @transform_2(%arg0: i32) -> (i32, i32) {
    %c0_i32 = arith.constant 0 : i32
    %c0_i32_0 = arith.constant 0 : i32
    return %arg0, %c0_i32 : i32, i32
  }
}

</mosaic_0001>

<bundles_post_ra>
// kernel: tpu_custom_call.1
= control target key start
LH: loop header
LB: loop body
LE: loop exit
PB: predicated region body
PF: predicated region fallthrough
CT: control target
= control target key end

     0   :  { %8 = vsyncpa [#allocation4], 0  ;;  %s1702_s0 = inlined_call_operand.<no memory space> [shape: s32[1], index: 0, kind: input, shape index: {}]   ;;  %s1703_s1 = inlined_call_operand.hbm [shape: f32[8,1024], index: 1, kind: input, shape index: {}]   ;;  %s1704_s2 = inlined_call_operand.hbm [shape: f32[8,1024], index: 2, kind: output, shape index: {}]  }
   0x1   :  { %9 = vsyncpa [#allocation5], 0  ;;  %s1221_s9 = smov [#allocation3]   ;;  %s1173_s13 = scalar_lea.hbm %s1703_s1, 1024 }
   0x2   :  { %s18_s10 = sshll.u32 %s1221_s9, 4  ;;  %p1174_p0 = scmp.ne.s32.totalorder %s1703_s1, %s1173_s13  ;;  %s19_s10 = int_to_ptr.vmem [resolvable:$true] %s18_s10 }
   0x3   :  { %p1177_p1 = scmp.lt.u32.totalorder %s1173_s13, %s1703_s1 }
   0x5   :  { %p1179_p2 = pnand %p1177_p1, %p1174_p0 }
   0x7   :  { %1182 = shalt.err (!%p1179_p2)
}
   0x8   :  { %s1183_s18 = scalar_lea.vmem %s19_s10, 1024  ;;  %p1188_p4 = scmp.lt.s32.totalorder %s19_s10, %s19_s10 }
   0x9   :  { %p1184_p3 = scmp.ne.s32.totalorder %s19_s10, %s1183_s18  ;;  %p1189_p5 = scmp.lt.s32.totalorder %s1183_s18, %s1183_s18 }
   0xb   :  { %p1190_p6 = por %p1189_p5, %p1188_p4 }
   0xd   :  { %p1191_p7 = pnand %p1190_p6, %p1184_p3 }
   0xf   :  { %1194 = shalt.err (!%p1191_p7)
}
  0x10   :  { %21 = dma.hbm_to_vmem [thread:$0]  %s1703_s1, 1024, %s19_s10, [#allocation4]  }
  0x11   :  { %1217 = dma.done.wait [#allocation4], 1024  }
  0x12   :  { %1218 = vsyncadd [#allocation4], 4294966272  ;;  %s26_s23 = sshrl.u32 %s1702_s0, 16  ;;  %v34_v0 = vlaneseq }
  0x13   :  { %s27_s26 = sxor.u32 %s26_s23, %s1702_s0  ;;  %s1228_s0 = smov [#allocation6]  }
  0x14   :  { %s28_s27 = smul.u32 2146121005, %s27_s26  ;;  %v35_v1 = vshrl.u32 %v34_v0, 7  ;;  %v37_v2 = vand.u32 127, %v34_v0  ;;  %s1072_s4 = sshll.u32 %s1228_s0, 4  ;;  %s1073_s4 = int_to_ptr.vmem [resolvable:$true] %s1072_s4 }
  0x15   :  { %s1195_s5 = scalar_lea.vmem %s1073_s4, 1024  ;;  %p1200_p9 = scmp.lt.s32.totalorder %s1073_s4, %s1073_s4 }
  0x16   :  { %s29_s28 = sshrl.u32 %s28_s27, 15  ;;  %v44_v3 = vmul.u32 1024, %v35_v1  ;;  %v38_v4 = vadd.s32 128, %v37_v2  ;;  %v39_v5 = vadd.s32 256, %v37_v2  ;;  %v40_v6 = vadd.s32 384, %v37_v2  ;;  %p1196_p8 = scmp.ne.s32.totalorder %s1073_s4, %s1195_s5 }
  0x17   :  { %s30_s1 = sxor.u32 %s29_s28, %s28_s27  ;;  %p1201_p10 = scmp.lt.s32.totalorder %s1195_s5, %s1195_s5 }
  0x18   :  { %s31_s29 = smul.u32 2221713035, %s30_s1  ;;  %v48_v7 = vadd.s32 %v44_v3, %v40_v6  ;;  %v45_v8 = vadd.s32 %v44_v3, %v37_v2  ;;  %v46_v9 = vadd.s32 %v44_v3, %v38_v4  ;;  %v47_v10 = vadd.s32 %v44_v3, %v39_v5 }
  0x19   :  { %p1202_p11 = por %p1201_p10, %p1200_p9 }
  0x1a   :  { %s32_s30 = sshrl.u32 %s31_s29, 16 }
  0x1b   :  { %s33_s3 = sxor.u32 %s32_s30, %s31_s29  ;;  %p1203_p12 = pnand %p1202_p11, %p1196_p8 }
  0x1c   :  { %v49_v11 = vstv %s33_s3 }
  0x1d   :  { %v50_v12 = vadd.s32 %v49_v11, %v45_v8  ;;  %v51_v13 = vadd.s32 %v49_v11, %v46_v9  ;;  %v52_v14 = vadd.s32 %v49_v11, %v47_v10  ;;  %v53_v15 = vadd.s32 %v49_v11, %v48_v7 }
  0x1f   :  { %v54_v16 = vadd.s32 512, %v50_v12  ;;  %v58_v17 = vshrl.u32 %v50_v12, 16  ;;  %v55_v18 = vadd.s32 512, %v51_v13  ;;  %v59_v19 = vshrl.u32 %v51_v13, 16 }
  0x20   :  { %v56_v20 = vadd.s32 512, %v52_v14  ;;  %v60_v21 = vshrl.u32 %v52_v14, 16  ;;  %v57_v22 = vadd.s32 512, %v53_v15  ;;  %v61_v56 = vshrl.u32 %v53_v15, 16 }
  0x21   :  { %v62_v23 = vxor.u32 %v58_v17, %v50_v12  ;;  %v90_v24 = vshrl.u32 %v54_v16, 16  ;;  %v63_v25 = vxor.u32 %v59_v19, %v51_v13  ;;  %v91_v26 = vshrl.u32 %v55_v18, 16 }
  0x22   :  { %v64_v27 = vxor.u32 %v60_v21, %v52_v14  ;;  %v92_v28 = vshrl.u32 %v56_v20, 16  ;;  %v93_v29 = vshrl.u32 %v57_v22, 16  ;;  %v65_v3 = vxor.u32 %v61_v56, %v53_v15 }
  0x23   :  { %v66_v30 = vmul.u32 2146121005, %v62_v23  ;;  %v94_v31 = vxor.u32 %v90_v24, %v54_v16  ;;  %v67_v32 = vmul.u32 2146121005, %v63_v25  ;;  %v95_v33 = vxor.u32 %v91_v26, %v55_v18 }
  0x24   :  { %v68_v34 = vmul.u32 2146121005, %v64_v27  ;;  %v96_v35 = vxor.u32 %v92_v28, %v56_v20  ;;  %v97_v36 = vxor.u32 %v93_v29, %v57_v22  ;;  %v69_v14 = vmul.u32 2146121005, %v65_v3 }
  0x25   :  { %v70_v37 = vshrl.u32 %v66_v30, 15  ;;  %v98_v38 = vmul.u32 2146121005, %v94_v31  ;;  %v71_v39 = vshrl.u32 %v67_v32, 15  ;;  %v99_v40 = vmul.u32 2146121005, %v95_v33 }
  0x26   :  { %v72_v41 = vshrl.u32 %v68_v34, 15  ;;  %v100_v42 = vmul.u32 2146121005, %v96_v35  ;;  %v101_v43 = vmul.u32 2146121005, %v97_v36  ;;  %v73_v24 = vshrl.u32 %v69_v14, 15 }
  0x27   :  { %v74_v44 = vxor.u32 %v70_v37, %v66_v30  ;;  %v102_v45 = vshrl.u32 %v98_v38, 15  ;;  %v75_v46 = vxor.u32 %v71_v39, %v67_v32  ;;  %v103_v47 = vshrl.u32 %v99_v40, 15 }
  0x28   :  { %v76_v48 = vxor.u32 %v72_v41, %v68_v34  ;;  %v104_v49 = vshrl.u32 %v100_v42, 15  ;;  %v105_v57 = vshrl.u32 %v101_v43, 15  ;;  %v1269_v34 = vxor.u32 %v73_v24, %v69_v14 }
  0x29   :  { %v78_v50 = vmul.u32 2221713035, %v74_v44  ;;  %v106_v51 = vxor.u32 %v102_v45, %v98_v38  ;;  %v79_v52 = vmul.u32 2221713035, %v75_v46  ;;  %v107_v53 = vxor.u32 %v103_v47, %v99_v40 }
  0x2a   :  { %v80_v54 = vmul.u32 2221713035, %v76_v48  ;;  %v108_v55 = vxor.u32 %v104_v49, %v100_v42  ;;  %v109_v4 = vxor.u32 %v105_v57, %v101_v43  ;;  %v81_v43 = vmul.u32 2221713035, %v1269_v34 }
  0x2b   :  { %v82_v58 = vshrl.u32 %v78_v50, 16  ;;  %v110_v59 = vmul.u32 2221713035, %v106_v51  ;;  %v111_v60 = vmul.u32 2221713035, %v107_v53  ;;  %v83_v61 = vshrl.u32 %v79_v52, 16 }
  0x2c   :  { %v112_v62 = vmul.u32 2221713035, %v108_v55  ;;  %v84_v8 = vshrl.u32 %v80_v54, 16  ;;  %v113_v19 = vmul.u32 2221713035, %v109_v4 }
  0x2d   :  { %v86_v63 = vxor.u32 %v82_v58, %v78_v50  ;;  %v114_v0 = vshrl.u32 %v110_v59, 16  ;;  %v115_v1 = vshrl.u32 %v111_v60, 16  ;;  %v87_v9 = vxor.u32 %v83_v61, %v79_v52 }
  0x2e   :  { %v116_v2 = vshrl.u32 %v112_v62, 16  ;;  %v88_v18 = vxor.u32 %v84_v8, %v80_v54  ;;  %v117_v28 = vshrl.u32 %v113_v19, 16  ;;  %v1279_v52 = vshrl.u32 %v81_v43, 16 }
  0x2f   :  { %v118_v5 = vxor.u32 %v114_v0, %v110_v59  ;;  %v122_v6 = vshrl.u32 %v86_v63, 9  ;;  %v119_v7 = vxor.u32 %v115_v1, %v111_v60  ;;  %v123_v20 = vshrl.u32 %v87_v9, 9 }
  0x30   :  { %v120_v10 = vxor.u32 %v116_v2, %v112_v62  ;;  %v124_v27 = vshrl.u32 %v88_v18, 9  ;;  %v121_v37 = vxor.u32 %v117_v28, %v113_v19  ;;  %v1222_v62 = vmov 683565275  }
  0x31   :  { %v126_v11 = vor.u32 1065353216, %v122_v6  ;;  %v134_v12 = vshrl.u32 %v118_v5, 9  ;;  %v135_v13 = vshrl.u32 %v119_v7, 9  ;;  %v127_v29 = vor.u32 1065353216, %v123_v20 }
  0x32   :  { %v136_v21 = vshrl.u32 %v120_v10, 9  ;;  %v128_v36 = vor.u32 1065353216, %v124_v27  ;;  %v137_v47 = vshrl.u32 %v121_v37, 9  ;;  %v1223_v0 = vmov 2475754826  }
  0x33   :  { %v138_v16 = vor.u32 1065353216, %v134_v12  ;;  %v139_v17 = vor.u32 1065353216, %v135_v13  ;;  %v146_v22 = vsub.f32 2.0, %v126_v11  ;;  %v147_v38 = vsub.f32 2.0, %v127_v29 }
  0x34   :  { %v140_v30 = vor.u32 1065353216, %v136_v21  ;;  %v148_v46 = vsub.f32 2.0, %v128_v36  ;;  %v1281_v56 = vor.u32 1065353216, %v137_v47  ;;  %v1224_v2 = vmov 2131351028  }
  0x35   :  { %v1081_v23 = vadd.f32 -1.0, %v138_v16  ;;  %v1082_v15 = vadd.f32 -1.0, %v139_v17  ;;  %1141 = vlog2.f32 %v146_v22  ;;  %v1225_v5 = vmov 2102212464  }
  0x36   :  { %v1083_v40 = vadd.f32 -1.0, %v140_v30  ;;  %1143 = vlog2.f32 %v147_v38  ;;  %v1226_v7 = vmov 920167782   ;;  %v1227_v16 = vmov 1326507024  }
  0x37   :  { %v1262_v25 = vmul.f32 6.2831855, %v1081_v23  ;;  %v1264_v26 = vmul.f32 6.2831855, %v1082_v15  ;;  %1145 = vlog2.f32 %v148_v46 }
  0x38   :  { %v1275_v49 = vmul.f32 6.2831855, %v1083_v40 }
  0x39   :  { %v201_v31 = vand.u32 2139095040, %v1262_v25  ;;  %v198_v32 = vand.u32 2147483647, %v1262_v25  ;;  %v304_v33 = vand.u32 2139095040, %v1264_v26  ;;  %v301_v48 = vand.u32 2147483647, %v1264_v26 }
  0x3a   :  { %v404_v59 = vand.u32 2147483647, %v1275_v49  ;;  %v407_v60 = vand.u32 2139095040, %v1275_v49 }
  0x3b   :  { %v202_v35 = vshrl.u32 %v201_v31, 23  ;;  %v305_v39 = vshrl.u32 %v304_v33, 23  ;;  %v205_v42 = vand.u32 8388607, %v198_v32  ;;  %v1285_v58 = vand.u32 8388607, %v301_v48 }
  0x3d   :  { %v1085_v41 = vadd.s32 4294967169, %v202_v35  ;;  %v1089_v45 = vadd.s32 4294967169, %v305_v39  ;;  %v206_v50 = vor.u32 8388608, %v205_v42  ;;  %v309_v39 = vor.u32 8388608, %v1285_v58 }
  0x3f   :  { %v208_v44 = vadd.s32 1, %v1085_v41  ;;  %v1142_v53 = vpop.eup %1141  ;;  %v311_v55 = vadd.s32 1, %v1089_v45  ;;  %v1294_v9 = vshll.u32 %v206_v50, 8 }
  0x40   :  { %v155_v4 = vmul.f32 0.6931472, %v1142_v53  ;;  %v1144_v21 = vpop.eup %1143 }
  0x41   :  { %vm209_vm0 = vcmp.gt.s32.totalorder %v208_v44, 0  ;;  %vm312_vm1 = vcmp.gt.s32.totalorder %v311_v55, 0  ;;  %v1302_v35 = vpop.eup %1145  ;;  %v157_v38 = vmul.f32 0.6931472, %v1144_v21 }
  0x42   :  { %v210_v51 = vsel %vm209_vm0, %v208_v44, 0  ;;  %v313_v15 = vsel %vm312_vm1, %v311_v55, 0  ;;  %v1305_v40 = vmul.f32 -2.0, %v155_v4  ;;  %vm200_vm0 = vcmp.lt.s32.totalorder %v1262_v25, 0 }
  0x43   :  { %v212_v54 = vand.u32 31, %v210_v51  ;;  %v211_v57 = vshrl.u32 %v210_v51, 5  ;;  %v315_v44 = vand.u32 31, %v313_v15  ;;  %v314_v50 = vshrl.u32 %v313_v15, 5 }
  0x44   :  { %1147 = vrsqrt.f32 %v1305_v40  ;;  %vm168_vm13 = vcmp.eq.f32.partialorder %v1305_v40, inf  ;;  %vm1421_vm1 = vcmp.le.f32.partialorder %v198_v32, 0.7853982 }
  0x45   :  { %v213_v61 = vsub.s32 32, %v212_v54  ;;  %v215_v63 = vshll.u32 %v1222_v62, %v212_v54  ;;  %v218_v1 = vshll.u32 %v1223_v0, %v212_v54  ;;  %v221_v3 = vshll.u32 %v1224_v2, %v212_v54 }
  0x46   :  { %v224_v6 = vshll.u32 %v1225_v5, %v212_v54  ;;  %v227_v8 = vshll.u32 %v1226_v7, %v212_v54  ;;  %vm230_vm2 = vcmp.lt.s32.totalorder %v211_v57, 1  ;;  %vm233_vm3 = vcmp.lt.s32.totalorder %v211_v57, 4 }
  0x47   :  { %v216_v10 = vshrl.u32 %v1223_v0, %v213_v61  ;;  %v219_v11 = vshrl.u32 %v1224_v2, %v213_v61  ;;  %v222_v12 = vshrl.u32 %v1225_v5, %v213_v61  ;;  %v214_v13 = vshrl.u32 %v1222_v62, %v213_v61 }
  0x48   :  { %v225_v14 = vshrl.u32 %v1226_v7, %v213_v61  ;;  %v228_v17 = vshrl.u32 %v1227_v16, %v213_v61  ;;  %vm232_vm4 = vcmp.lt.s32.totalorder %v211_v57, 3  ;;  %vm231_vm5 = vcmp.lt.s32.totalorder %v211_v57, 2 }
  0x49   :  { %v217_v18 = vor.u32 %v216_v10, %v215_v63  ;;  %v220_v19 = vor.u32 %v219_v11, %v218_v1  ;;  %v223_v20 = vor.u32 %v222_v12, %v221_v3  ;;  %v316_v54 = vsub.s32 32, %v315_v44 }
  0x4a   :  { %v226_v22 = vor.u32 %v225_v14, %v224_v6  ;;  %v229_v23 = vor.u32 %v228_v17, %v227_v8  ;;  %v318_v55 = vshll.u32 %v1222_v62, %v315_v44  ;;  %v321_v58 = vshll.u32 %v1223_v0, %v315_v44 }
  0x4b   :  { %v235_v24 = vsel %vm233_vm3, %v223_v20, 2102212464  ;;  %v238_v27 = vsel %vm230_vm2, %v217_v18, %v220_v19  ;;  %v242_v28 = vsel %vm230_vm2, %v220_v19, %v223_v20  ;;  %v234_v29 = vsel %vm230_vm2, %v214_v13, %v217_v18 }
  0x4c   :  { %v236_v30 = vsel %vm232_vm4, %v220_v19, %v235_v24  ;;  %v239_v31 = vsel %vm233_vm3, %v226_v22, 920167782  ;;  %v243_v33 = vsel %vm233_vm3, %v229_v23, 1326507024  ;;  %v324_v61 = vshll.u32 %v1224_v2, %v315_v44 }
  0x4d   :  { %v240_v36 = vsel %vm232_vm4, %v223_v20, %v239_v31  ;;  %v244_v37 = vsel %vm232_vm4, %v226_v22, %v243_v33  ;;  %v237_v45 = vsel %vm231_vm5, %v234_v29, %v236_v30  ;;  %v327_v57 = vshll.u32 %v1225_v5, %v315_v44 }
  0x4e   :  { %v241_v41 = vsel %vm231_vm5, %v238_v27, %v240_v36  ;;  %v245_v42 = vsel %vm231_vm5, %v242_v28, %v244_v37  ;;  %v408_v63 = vshrl.u32 %v407_v60, 23  ;;  %v1324_v1 = vmul.f32 -2.0, %v157_v38 }
  0x4f   :  { %v1311_v46 = vmul.u32.u64.low %v1294_v9, %v245_v42  ;;  %v1312_v47 = vmul.u32.u64.high %v1294_v9, %v245_v42, %v1311_v46  ;;  %v1315_v51 = vmul.u32.u64.low %v1294_v9, %v241_v41  ;;  %v1316_v53 = vmul.u32.u64.high %v1294_v9, %v241_v41, %v1315_v51 }
  0x50   :  { %v319_v3 = vshrl.u32 %v1223_v0, %v316_v54  ;;  %v322_v4 = vshrl.u32 %v1224_v2, %v316_v54  ;;  %v253_v6 = vmul.u32 %v1294_v9, %v237_v45  ;;  %v325_v8 = vshrl.u32 %v1225_v5, %v316_v54 }
  0x51   :  { %vm255_vm6 = vc.u32 %v1312_v47, %v1315_v51  ;;  %v328_v10 = vshrl.u32 %v1226_v7, %v316_v54  ;;  %v256_v11 = vadd.s32 1, %v1316_v53  ;;  %vm333_vm7 = vcmp.lt.s32.totalorder %v314_v50, 1 }
  0x52   :  { %v320_v60 = vor.u32 %v319_v3, %v318_v55  ;;  %v323_v12 = vor.u32 %v322_v4, %v321_v58  ;;  %v326_v13 = vor.u32 %v325_v8, %v324_v61  ;;  %v330_v17 = vshll.u32 %v1226_v7, %v315_v44  ;;  %v1148_v44 = vpop.eup %1147 }
  0x53   :  { %v329_v14 = vor.u32 %v328_v10, %v327_v57  ;;  %v331_v18 = vshrl.u32 %v1227_v16, %v316_v54  ;;  %v257_v9 = vsel %vm255_vm6, %v256_v11, %v1316_v53  ;;  %v317_v19 = vshrl.u32 %v1222_v62, %v316_v54 }
  0x54   :  { %vm335_vm8 = vcmp.lt.s32.totalorder %v314_v50, 3  ;;  %v349_v20 = vshll.u32 %v309_v39, 8  ;;  %v258_v21 = vadd.s32 %v257_v9, %v253_v6  ;;  %vm334_vm9 = vcmp.lt.s32.totalorder %v314_v50, 2 }
  0x55   :  { %v332_v22 = vor.u32 %v331_v18, %v330_v17  ;;  %vm336_vm10 = vcmp.lt.s32.totalorder %v314_v50, 4  ;;  %v341_v15 = vsel %vm333_vm7, %v320_v60, %v323_v12  ;;  %v1093_v27 = vadd.s32 4294967169, %v408_v63 }
  0x56   :  { %v338_v23 = vsel %vm336_vm10, %v326_v13, 2102212464  ;;  %v342_v24 = vsel %vm336_vm10, %v329_v14, 920167782  ;;  %v259_v28 = vadd.s32 536870912, %v258_v21  ;;  %1149 = vrsqrt.f32 %v1324_v1 }
  0x57   :  { %v343_v29 = vsel %vm335_vm8, %v326_v13, %v342_v24  ;;  %v345_v30 = vsel %vm333_vm7, %v323_v12, %v326_v13  ;;  %v337_v31 = vsel %vm333_vm7, %v317_v19, %v320_v60  ;;  %v339_v33 = vsel %vm335_vm8, %v323_v12, %v338_v23 }
  0x58   :  { %v344_v36 = vsel %vm334_vm9, %v341_v15, %v343_v29  ;;  %v346_v37 = vsel %vm336_vm10, %v332_v22, 1326507024  ;;  %v1345_v38 = vshrl.u32 %v259_v28, 30  ;;  %v89_v46 = vxor.u32 %v1279_v52, %v81_v43 }
  0x59   :  { %v347_v39 = vsel %vm335_vm8, %v329_v14, %v346_v37  ;;  %v1348_v41 = vmul.u32.u64.low %v349_v20, %v344_v36  ;;  %v1349_v42 = vmul.u32.u64.high %v349_v20, %v344_v36, %v1348_v41  ;;  %v340_v54 = vsel %vm334_vm9, %v337_v31, %v339_v33 }
  0x5a   :  { %v348_v45 = vsel %vm334_vm9, %v345_v30, %v347_v39  ;;  %v261_v53 = vshll.u32 %v1345_v38, 30  ;;  %v414_v61 = vadd.s32 1, %v1093_v27  ;;  %v1084_v57 = vadd.f32 -1.0, %v1281_v56 }
  0x5b   :  { %v1357_v55 = vmul.u32.u64.low %v349_v20, %v348_v45  ;;  %v1358_v58 = vmul.u32.u64.high %v349_v20, %v348_v45, %v1357_v55  ;;  %v359_v3 = vadd.s32 1, %v1349_v42  ;;  %v411_v4 = vand.u32 8388607, %v404_v59 }
  0x5c   :  { %v1361_v63 = vsub.s32 %v258_v21, %v261_v53  ;;  %v356_v34 = vmul.u32 %v349_v20, %v340_v54  ;;  %vm415_vm11 = vcmp.gt.s32.totalorder %v414_v61, 0  ;;  %v125_v43 = vshrl.u32 %v89_v46, 9 }
  0x5d   :  { %vm358_vm12 = vc.u32 %v1358_v58, %v1348_v41  ;;  %v167_v50 = vmul.f32 %v1148_v44, %v1305_v40  ;;  %v416_v8 = vsel %vm415_vm11, %v414_v61, 0  ;;  %v1370_v56 = vmul.f32 6.2831855, %v1084_v57 }
  0x5e   :  { %v264_v52 = vsub.s32 0, %v1361_v63  ;;  %v360_v6 = vsel %vm358_vm12, %v359_v3, %v1349_v42  ;;  %v412_v60 = vor.u32 8388608, %v411_v4  ;;  %v418_v13 = vand.u32 31, %v416_v8 }
  0x5f   :  { %v361_v12 = vadd.s32 %v360_v6, %v356_v34  ;;  %v1374_v14 = vor.u32 1065353216, %v125_v43  ;;  %v507_v17 = vand.u32 2147483647, %v1370_v56  ;;  %v171_v18 = vand.u32 2147483648, %v1305_v40 }
  0x60   :  { %v1150_v10 = vpop.eup %1149  ;;  %v1086_v11 = vmin.u32 %v264_v52, %v1361_v63  ;;  %v178_v19 = vand.u32 2147483648, %v1324_v1  ;;  %v1380_v20 = vmul.f32 0.6931472, %v1302_v35  ;;  %v1383_v21 = vsel %vm168_vm13, %v1305_v40, %v167_v50 }
  0x61   :  { %v254_v22 = vadd.s32 %v1315_v51, %v1312_v47  ;;  %v362_v23 = vadd.s32 536870912, %v361_v12  ;;  %v419_v15 = vsub.s32 32, %v418_v13  ;;  %v284_v27 = vsub.s32 4, %v1345_v38 }
  0x62   :  { %v266_v9 = vclz %v1086_v11  ;;  %v1389_v28 = vmul.f32 %v1150_v10, %v1324_v1  ;;  %v1391_v29 = vshll.u32 %v412_v60, 8  ;;  %v1395_v35 = vshrl.u32 %v416_v8, 5 }
  0x63   :  { %v1393_v30 = vshrl.u32 %v362_v23, 30  ;;  %v421_v31 = vshll.u32 %v1222_v62, %v418_v13  ;;  %v424_v33 = vshll.u32 %v1223_v0, %v418_v13  ;;  %v422_v47 = vshrl.u32 %v1223_v0, %v419_v15 }
  0x64   :  { %v1087_v24 = vadd.s32 4294967294, %v266_v9  ;;  %v425_v51 = vshrl.u32 %v1224_v2, %v419_v15  ;;  %v427_v36 = vshll.u32 %v1224_v2, %v418_v13  ;;  %v428_v42 = vshrl.u32 %v1225_v5, %v419_v15 }
  0x65   :  { %v364_v39 = vshll.u32 %v1393_v30, 30  ;;  %v430_v44 = vshll.u32 %v1225_v5, %v418_v13  ;;  %v431_v54 = vshrl.u32 %v1226_v7, %v419_v15  ;;  %v1408_v55 = vadd.s32 %v1348_v41, %v1358_v58 }
  0x66   :  { %vm1088_vm14 = vcmp.lt.s32.totalorder %v1087_v24, 0  ;;  %v420_v57 = vshrl.u32 %v1222_v62, %v419_v15  ;;  %v510_v3 = vand.u32 2139095040, %v1370_v56  ;;  %vm175_vm15 = vcmp.eq.f32.partialorder %v1324_v1, inf }
  0x67   :  { %v269_v37 = vsel %vm1088_vm14, 0, %v1087_v24  ;;  %v1410_v61 = vsub.s32 %v361_v12, %v364_v39  ;;  %v423_v43 = vor.u32 %v422_v47, %v421_v31  ;;  %v426_v52 = vor.u32 %v425_v51, %v424_v33 }
  0x68   :  { %v270_v45 = vsub.s32 32, %v269_v37  ;;  %v271_v46 = vshll.u32 %v1361_v63, %v269_v37  ;;  %v274_v53 = vsub.s32 4294967266, %v269_v37  ;;  %v429_v50 = vor.u32 %v428_v42, %v427_v36 }
  0x69   :  { %v367_v63 = vsub.s32 0, %v1410_v61  ;;  %v433_v41 = vshll.u32 %v1226_v7, %v418_v13  ;;  %v434_v58 = vshrl.u32 %v1227_v16, %v419_v15  ;;  %v432_v11 = vor.u32 %v431_v54, %v430_v44 }
  0x6a   :  { %v272_v4 = vshrl.u32 %v254_v22, %v270_v45  ;;  %v275_v34 = vadd.s32 127, %v274_v53  ;;  %vm436_vm2 = vcmp.lt.s32.totalorder %v1395_v35, 1  ;;  %v387_v12 = vsub.s32 4, %v1393_v30 }
  0x6b   :  { %v1090_v60 = vmin.u32 %v367_v63, %v1410_v61  ;;  %vm437_vm3 = vcmp.lt.s32.totalorder %v1395_v35, 2  ;;  %v511_v13 = vshrl.u32 %v510_v3, 23  ;;  %v435_v23 = vor.u32 %v434_v58, %v433_v41 }
  0x6c   :  { %v273_v8 = vor.u32 %v272_v4, %v271_v46  ;;  %v276_v10 = vshll.u32 %v275_v34, 23  ;;  %vm438_vm4 = vcmp.lt.s32.totalorder %v1395_v35, 3  ;;  %vm303_vm5 = vcmp.lt.s32.totalorder %v1264_v26, 0 }
  0x6d   :  { %v369_v32 = vclz %v1090_v60  ;;  %vm439_vm6 = vcmp.lt.s32.totalorder %v1395_v35, 4  ;;  %v440_v15 = vsel %vm436_vm2, %v420_v57, %v423_v43  ;;  %v444_v24 = vsel %vm436_vm2, %v423_v43, %v426_v52 }
  0x6e   :  { %v277_v9 = vor.u32 4788187, %v276_v10  ;;  %v280_v22 = vcvt.s32.f32 %v273_v8  ;;  %v441_v33 = vsel %vm439_vm6, %v429_v50, 2102212464  ;;  %v445_v47 = vsel %vm439_vm6, %v432_v11, 920167782 }
  0x6f   :  { %v448_v51 = vsel %vm436_vm2, %v426_v52, %v429_v50  ;;  %vm170_vm7 = vcmp.eq.f32.partialorder %v1305_v40, 0.0  ;;  %vm177_vm8 = vcmp.eq.f32.partialorder %v1324_v1, 0.0  ;;  %v1091_v36 = vadd.s32 4294967294, %v369_v32 }
  0x70   :  { %v278_v31 = vand.u32 2147483647, %v277_v9  ;;  %v442_v37 = vsel %vm438_vm4, %v426_v52, %v441_v33  ;;  %v446_v39 = vsel %vm438_vm4, %v429_v50, %v445_v47  ;;  %v449_v42 = vsel %vm439_vm6, %v435_v23, 1326507024 }
  0x71   :  { %vm1446_vm9 = vcmp.le.f32.partialorder %v301_v48, 0.7853982  ;;  %v443_v46 = vsel %vm437_vm3, %v440_v15, %v442_v37  ;;  %v447_v53 = vsel %vm437_vm3, %v444_v24, %v446_v39  ;;  %v450_v54 = vsel %vm438_vm4, %v432_v11, %v449_v42 }
  0x72   :  { %v281_v44 = vmul.f32 %v280_v22, %v278_v31  ;;  %vm1092_vm10 = vcmp.lt.s32.totalorder %v1091_v36, 0  ;;  %v451_v57 = vsel %vm437_vm3, %v448_v51, %v450_v54  ;;  %v176_v63 = vsel %vm175_vm15, %v1324_v1, %v1389_v28 }
  0x73   :  { %v1459_v3 = vmul.u32.u64.low %v1391_v29, %v447_v53  ;;  %v1460_v4 = vmul.u32.u64.high %v1391_v29, %v447_v53, %v1459_v3  ;;  %v372_v34 = vsel %vm1092_vm10, 0, %v1091_v36  ;;  %v285_v8 = vsel %vm200_vm0, %v284_v27, %v1345_v38 }
  0x74   :  { %v282_v48 = vxor.u32 2147483648, %v281_v44  ;;  %v1463_v43 = vmul.u32.u64.low %v1391_v29, %v451_v57  ;;  %v1464_v52 = vmul.u32.u64.high %v1391_v29, %v451_v57, %v1463_v43  ;;  %v373_v50 = vsub.s32 32, %v372_v34 }
  0x75   :  { %v374_v41 = vshll.u32 %v1410_v61, %v372_v34  ;;  %v377_v35 = vsub.s32 4294967266, %v372_v34  ;;  %v459_v10 = vmul.u32 %v1391_v29, %v443_v46  ;;  %v1097_v11 = vadd.s32 4294967169, %v511_v13 }
  0x76   :  { %v283_v58 = vsel %vm200_vm0, %v282_v48, %v281_v44  ;;  %v375_v60 = vshrl.u32 %v1408_v55, %v373_v50  ;;  %v462_v9 = vadd.s32 1, %v1460_v4  ;;  %v388_v22 = vsel %vm303_vm5, %v387_v12, %v1393_v30 }
  0x77   :  { %v286_v28 = vsel %vm1421_vm1, %v1262_v25, %v283_v58  ;;  %v378_v61 = vadd.s32 127, %v377_v35  ;;  %vm461_vm11 = vc.u32 %v1464_v52, %v1459_v3  ;;  %v514_v38 = vand.u32 8388607, %v507_v17 }
  0x78   :  { %1151 = vcosq.f32 %v286_v28  ;;  %v376_v27 = vor.u32 %v375_v60, %v374_v41  ;;  %v463_v13 = vsel %vm461_vm11, %v462_v9, %v1460_v4  ;;  %v287_v55 = vsel %vm1421_vm1, 0, %v285_v8 }
  0x79   :  { %1153 = vsinq.f32 %v286_v28  ;;  %v379_v29 = vshll.u32 %v378_v61, 23  ;;  %v1494_v23 = vmul.f32 -2.0, %v1380_v20  ;;  %v464_v32 = vadd.s32 %v463_v13, %v459_v10 }
  0x7a   :  { %v517_v15 = vadd.s32 1, %v1097_v11  ;;  %v291_v24 = vand.u32 3, %v287_v55  ;;  %v383_v12 = vcvt.s32.f32 %v376_v27  ;;  %v390_v31 = vsel %vm1446_vm9, 0, %v388_v22 }
  0x7b   :  { %v380_v30 = vor.u32 4788187, %v379_v29  ;;  %v1503_v33 = vsel %vm170_vm7, %v171_v18, %v1383_v21  ;;  %v1509_v20 = vsel %vm177_vm8, %v178_v19, %v176_v63  ;;  %v465_v6 = vadd.s32 536870912, %v464_v32 }
  0x7c   :  { %vm518_vm12 = vcmp.gt.s32.totalorder %v517_v15, 0  ;;  %vm290_vm13 = vweird.f32 %v1262_v25  ;;  %v515_v51 = vor.u32 8388608, %v514_v38  ;;  %v707_v37 = vadd.s32 3, %v287_v55 }
  0x7d   :  { %v381_v47 = vand.u32 2147483647, %v380_v30  ;;  %v519_v36 = vsel %vm518_vm12, %v517_v15, 0  ;;  %1155 = vrsqrt.f32 %v1494_v23  ;;  %v1513_v39 = vshrl.u32 %v465_v6, 30  ;;  %v1034_v30 = vld [vmem:[#allocation3] sm:$0xff] }
  0x7e   :  { %v521_v40 = vand.u32 31, %v519_v36  ;;  %v811_v18 = vadd.s32 3, %v390_v31  ;;  %vm292_vm14 = vcmp.lt.s32.totalorder %v291_v24, 2  ;;  %vm293_vm15 = vcmp.eq.s32.totalorder %v291_v24, 0 }
  0x7f   :  { %vm296_vm0 = vcmp.eq.s32.totalorder %v291_v24, 2  ;;  %v384_v1 = vmul.f32 %v383_v12, %v381_v47  ;;  %v1515_v19 = vand.u32 3, %v390_v31  ;;  %v1518_v21 = vadd.s32 %v1459_v3, %v1464_v52 }
  0x80   :  { %v467_v42 = vshll.u32 %v1513_v39, 30  ;;  %v522_v44 = vsub.s32 32, %v521_v40  ;;  %v524_v53 = vshll.u32 %v1222_v62, %v521_v40  ;;  %v1522_v54 = vshll.u32 %v515_v51, 8 }
  0x81   :  { %v385_v46 = vxor.u32 2147483648, %v384_v1  ;;  %v1524_v57 = vand.u32 3, %v707_v37  ;;  %v1530_v34 = vshrl.u32 %v519_v36, 5  ;;  %v1533_v3 = vand.u32 3, %v811_v18 }
  0x82   :  { %v1526_v4 = vpop.eup %1151  ;;  %v1528_v48 = vsub.s32 %v464_v32, %v467_v42  ;;  %v525_v43 = vshrl.u32 %v1223_v0, %v522_v44  ;;  %v527_v41 = vshll.u32 %v1223_v0, %v521_v40  ;;  %v528_v35 = vshrl.u32 %v1224_v2, %v522_v44 }
  0x83   :  { %v1535_v52 = vpop.eup %1153  ;;  %v297_v63 = vxor.u32 2147483648, %v1526_v4  ;;  %v386_v50 = vsel %vm303_vm5, %v385_v46, %v384_v1  ;;  %v490_v11 = vsub.s32 4, %v1513_v39  ;;  %v530_v0 = vshll.u32 %v1224_v2, %v521_v40 }
  0x84   :  { %v294_v58 = vxor.u32 2147483648, %v1535_v52  ;;  %v389_v8 = vsel %vm1446_vm9, %v1264_v26, %v386_v50  ;;  %v470_v10 = vsub.s32 0, %v1528_v48  ;;  %v526_v60 = vor.u32 %v525_v43, %v524_v53 }
  0x85   :  { %v298_v28 = vsel %vm296_vm0, %v297_v63, %v1535_v52  ;;  %1157 = vcosq.f32 %v389_v8  ;;  %v533_v9 = vshll.u32 %v1225_v5, %v521_v40  ;;  %vm399_vm1 = vcmp.eq.s32.totalorder %v1515_v19, 2 }
  0x86   :  { %v295_v61 = vsel %vm293_vm15, %v1526_v4, %v294_v58  ;;  %1159 = vsinq.f32 %v389_v8  ;;  %v1094_v45 = vmin.u32 %v470_v10, %v1528_v48  ;;  %v523_v38 = vshrl.u32 %v1222_v62, %v522_v44 }
  0x87   :  { %v299_v22 = vsel %vm292_vm14, %v295_v61, %v298_v28  ;;  %v529_v27 = vor.u32 %v528_v35, %v527_v41  ;;  %v531_v29 = vshrl.u32 %v1225_v5, %v522_v44  ;;  %vm710_vm2 = vcmp.eq.s32.totalorder %v1524_v57, 0  ;;  %v1564_v2 = vpop.eup %1155 }
  0x88   :  { %v300_v13 = vsel %vm290_vm13, nan, %v299_v22  ;;  %vm396_vm3 = vcmp.eq.s32.totalorder %v1515_v19, 0  ;;  %v472_v55 = vclz %v1094_v45  ;;  %v534_v32 = vshrl.u32 %v1226_v7, %v522_v44 }
  0x89   :  { %v536_v15 = vshll.u32 %v1226_v7, %v521_v40  ;;  %vm713_vm4 = vcmp.eq.s32.totalorder %v1524_v57, 2  ;;  %v610_v62 = vmul.f32 %v300_v13, %v1503_v33  ;;  %vm395_vm5 = vcmp.lt.s32.totalorder %v1515_v19, 2 }
  0x8a   :  { %v532_v5 = vor.u32 %v531_v29, %v530_v0  ;;  %v537_v24 = vshrl.u32 %v1227_v16, %v522_v44  ;;  %vm539_vm6 = vcmp.lt.s32.totalorder %v1530_v34, 1  ;;  %vm709_vm7 = vcmp.lt.s32.totalorder %v1524_v57, 2 }
  0x8b   :  { %vm393_vm8 = vweird.f32 %v1264_v26  ;;  %v1095_v12 = vadd.s32 4294967294, %v472_v55  ;;  %v535_v31 = vor.u32 %v534_v32, %v533_v9  ;;  %vm540_vm9 = vcmp.lt.s32.totalorder %v1530_v34, 2 }
  0x8c   :  { %vm541_vm10 = vcmp.lt.s32.totalorder %v1530_v34, 3  ;;  %v1042_v7 = vmul.f32 0.05, %v610_v62  ;;  %v538_v6 = vor.u32 %v537_v24, %v536_v15  ;;  %vm542_vm11 = vcmp.lt.s32.totalorder %v1530_v34, 4 }
  0x8d   :  { %v543_v16 = vsel %vm539_vm6, %v523_v38, %v526_v60  ;;  %vm1096_vm12 = vcmp.lt.s32.totalorder %v1095_v12, 0  ;;  %v544_v47 = vsel %vm542_vm11, %v532_v5, 2102212464  ;;  %v547_v51 = vsel %vm539_vm6, %v526_v60, %v529_v27 }
  0x8e   :  { %v548_v36 = vsel %vm542_vm11, %v535_v31, 920167782  ;;  %v1050_v37 = vadd.f32 %v1042_v7, %v1034_v30  ;;  %v475_v40 = vsel %vm1096_vm12, 0, %v1095_v12  ;;  %v545_v18 = vsel %vm541_vm10, %v529_v27, %v544_v47  ;;  %v1038_v12 = vld [vmem:[#allocation3 + $0x20] sm:$0xff] }
  0x8f   :  { %v549_v1 = vsel %vm541_vm10, %v532_v5, %v548_v36  ;;  %v476_v42 = vsub.s32 32, %v475_v40  ;;  %v477_v44 = vshll.u32 %v1528_v48, %v475_v40  ;;  %v480_v46 = vsub.s32 4294967266, %v475_v40  ;;  %v1158_v43 = vpop.eup %1157 }
  0x90   :  { %v546_v53 = vsel %vm540_vm9, %v543_v16, %v545_v18  ;;  %1058 = vst [vmem:[#allocation6] sm:$0xff] %v1050_v37  ;;  %v550_v50 = vsel %vm540_vm9, %v547_v51, %v549_v1  ;;  %v551_v41 = vsel %vm539_vm6, %v529_v27, %v532_v5  ;;  %v552_v35 = vsel %vm542_vm11, %v538_v6, 1326507024  ;;  %v1160_v10 = vpop.eup %1159 }
  0x91   :  { %v562_v8 = vmul.u32 %v1522_v54, %v546_v53  ;;  %v400_v28 = vxor.u32 2147483648, %v1158_v43  ;;  %vm406_vm14 = vcmp.lt.s32.totalorder %v1275_v49, 0  ;;  %v478_v48 = vshrl.u32 %v1518_v21, %v476_v42 }
  0x92   :  { %v481_v60 = vadd.s32 127, %v480_v46  ;;  %v553_v0 = vsel %vm541_vm10, %v535_v31, %v552_v35  ;;  %v397_v61 = vxor.u32 2147483648, %v1160_v10  ;;  %v712_v21 = vsel %vm710_vm2, %v1526_v4, %v294_v58 }
  0x93   :  { %v554_v45 = vsel %vm540_vm9, %v551_v41, %v553_v0  ;;  %v1610_v9 = vmul.u32.u64.low %v1522_v54, %v550_v50  ;;  %v1611_v22 = vmul.u32.u64.high %v1522_v54, %v550_v50, %v1610_v9  ;;  %v401_v38 = vsel %vm399_vm1, %v400_v28, %v1160_v10 }
  0x94   :  { %v479_v27 = vor.u32 %v478_v48, %v477_v44  ;;  %v482_v29 = vshll.u32 %v481_v60, 23  ;;  %v398_v13 = vsel %vm396_vm3, %v1158_v43, %v397_v61  ;;  %v715_v32 = vsel %vm713_vm4, %v297_v63, %v1535_v52  ;;  %v1035_v63 = vld [vmem:[#allocation3 + $0x8] sm:$0xff] }
  0x95   :  { %v1623_v34 = vmul.u32.u64.low %v1522_v54, %v554_v45  ;;  %v1624_v55 = vmul.u32.u64.high %v1522_v54, %v554_v45, %v1623_v34  ;;  %v402_v15 = vsel %vm395_vm5, %v398_v13, %v401_v38  ;;  %v716_v58 = vsel %vm709_vm7, %v712_v21, %v715_v32 }
  0x96   :  { %v483_v62 = vor.u32 4788187, %v482_v29  ;;  %v486_v5 = vcvt.s32.f32 %v479_v27  ;;  %v403_v24 = vsel %vm393_vm8, nan, %v402_v15  ;;  %v565_v54 = vadd.s32 1, %v1611_v22 }
  0x97   :  { %v717_v30 = vsel %vm290_vm13, nan, %v716_v58  ;;  %vm813_vm15 = vcmp.lt.s32.totalorder %v1533_v3, 2  ;;  %v611_v4 = vmul.f32 %v403_v24, %v1509_v20  ;;  %vm814_vm0 = vcmp.eq.s32.totalorder %v1533_v3, 0 }
  0x98   :  { %v484_v52 = vand.u32 2147483647, %v483_v62  ;;  %v1030_v19 = vmul.f32 %v717_v30, %v1503_v33  ;;  %v1645_v57 = vadd.s32 %v1610_v9, %v1624_v55  ;;  %vm564_vm1 = vc.u32 %v1624_v55, %v1610_v9 }
  0x99   :  { %v816_v31 = vsel %vm814_vm0, %v1158_v43, %v397_v61  ;;  %vm817_vm2 = vcmp.eq.s32.totalorder %v1533_v3, 2  ;;  %v1043_v25 = vmul.f32 0.05, %v611_v4  ;;  %v566_v6 = vsel %vm564_vm1, %v565_v54, %v1611_v22  ;;  %v1039_v3 = vld [vmem:[#allocation3 + $0x28] sm:$0xff] }
  0x9a   :  { %v487_v7 = vmul.f32 %v486_v5, %v484_v52  ;;  %v1046_v16 = vmul.f32 0.05, %v1030_v19  ;;  %vm405_vm13 = vcmp.le.f32.partialorder %v404_v59, 0.7853982  ;;  %v491_v33 = vsel %vm406_vm14, %v490_v11, %v1513_v39  ;;  %v1036_v19 = vld [vmem:[#allocation3 + $0x10] sm:$0xff] }
  0x9b   :  { %v567_v47 = vadd.s32 %v566_v6, %v562_v8  ;;  %v819_v51 = vsel %vm817_vm2, %v400_v28, %v1160_v10  ;;  %v1051_v36 = vadd.f32 %v1043_v25, %v1035_v63  ;;  %v493_v11 = vsel %vm405_vm13, 0, %v491_v33 }
  0x9c   :  { %v488_v37 = vxor.u32 2147483648, %v487_v7  ;;  %v1054_v40 = vadd.f32 %v1046_v16, %v1038_v12  ;;  %v820_v18 = vsel %vm813_vm15, %v816_v31, %v819_v51  ;;  %v149_v46 = vsub.f32 2.0, %v1374_v14 }
  0x9d   :  { %v568_v1 = vadd.s32 536870912, %v567_v47  ;;  %v821_v42 = vsel %vm393_vm8, nan, %v820_v18  ;;  %1059 = vst [vmem:[#allocation6 + $0x8] sm:$0xff] %v1051_v36  ;;  %v915_v41 = vadd.s32 3, %v493_v11  ;;  %v497_v10 = vand.u32 3, %v493_v11 }
  0x9e   :  { %v489_v59 = vsel %vm406_vm14, %v488_v37, %v487_v7  ;;  %1062 = vst [vmem:[#allocation6 + $0x20] sm:$0xff] %v1054_v40  ;;  %v1031_v44 = vmul.f32 %v821_v42, %v1509_v20  ;;  %v181_v20 = vmul.f32 %v1564_v2, %v1494_v23  ;;  %vm182_vm3 = vcmp.eq.f32.partialorder %v1494_v23, inf  ;;  %v1040_v7 = vld [vmem:[#allocation3 + $0x30] sm:$0xff] }
  0x9f   :  { %v492_v39 = vsel %vm405_vm13, %v1275_v49, %v489_v59  ;;  %v1666_v53 = vshrl.u32 %v568_v1, 30  ;;  %v916_v28 = vand.u32 3, %v915_v41  ;;  %vm184_vm4 = vcmp.eq.f32.partialorder %v1494_v23, 0.0 }
  0xa0   :  { %1161 = vcosq.f32 %v492_v39  ;;  %v1047_v43 = vmul.f32 0.05, %v1031_v44  ;;  %v183_v0 = vsel %vm182_vm3, %v1494_v23, %v181_v20  ;;  %v185_v61 = vand.u32 2147483648, %v1494_v23 }
  0xa1   :  { %1163 = vsinq.f32 %v492_v39  ;;  %v570_v26 = vshll.u32 %v1666_v53, 30  ;;  %vm502_vm5 = vcmp.eq.s32.totalorder %v497_v10, 2  ;;  %vm921_vm6 = vcmp.eq.s32.totalorder %v916_v28, 2 }
  0xa2   :  { %v1055_v50 = vadd.f32 %v1047_v43, %v1039_v3  ;;  %1165 = vlog2.f32 %v149_v46  ;;  %vm499_vm7 = vcmp.eq.s32.totalorder %v497_v10, 0  ;;  %vm918_vm8 = vcmp.eq.s32.totalorder %v916_v28, 0 }
  0xa3   :  { %v571_v35 = vsub.s32 %v567_v47, %v570_v26  ;;  %vm496_vm9 = vweird.f32 %v1275_v49  ;;  %vm498_vm10 = vcmp.lt.s32.totalorder %v497_v10, 2  ;;  %vm917_vm12 = vcmp.lt.s32.totalorder %v916_v28, 2 }
  0xa4   :  { %1063 = vst [vmem:[#allocation6 + $0x28] sm:$0xff] %v1055_v50  ;;  %v186_v21 = vsel %vm184_vm4, %v185_v61, %v183_v0  ;;  %vm509_vm14 = vcmp.lt.s32.totalorder %v1370_v56, 0  ;;  %vm508_vm15 = vcmp.le.f32.partialorder %v507_v17, 0.7853982 }
  0xa5   :  { %v573_v8 = vsub.s32 0, %v571_v35 }
  0xa7   :  { %v1098_v14 = vmin.u32 %v573_v8, %v571_v35 }
  0xa9   :  { %v575_v48 = vclz %v1098_v14 }
  0xaa   :  { %v1162_v60 = vpop.eup %1161 }
  0xab   :  { %v1164_v45 = vpop.eup %1163  ;;  %v503_v9 = vxor.u32 2147483648, %v1162_v60  ;;  %v1099_v22 = vadd.s32 4294967294, %v575_v48 }
  0xac   :  { %v500_v2 = vxor.u32 2147483648, %v1164_v45  ;;  %v1166_v38 = vpop.eup %1165 }
  0xad   :  { %v504_v27 = vsel %vm502_vm5, %v503_v9, %v1164_v45  ;;  %vm1100_vm11 = vcmp.lt.s32.totalorder %v1099_v22, 0  ;;  %v923_v29 = vsel %vm921_vm6, %v503_v9, %v1164_v45  ;;  %v161_v24 = vmul.f32 0.6931472, %v1166_v38  ;;  %v1037_v9 = vld [vmem:[#allocation3 + $0x18] sm:$0xff] }
  0xae   :  { %v501_v13 = vsel %vm499_vm7, %v1162_v60, %v500_v2  ;;  %v578_v34 = vsel %vm1100_vm11, 0, %v1099_v22  ;;  %v920_v55 = vsel %vm918_vm8, %v1162_v60, %v500_v2  ;;  %vm599_vm7 = vweird.f32 %v1370_v56  ;;  %v1041_v22 = vld [vmem:[#allocation3 + $0x38] sm:$0xff] }
  0xaf   :  { %v505_v32 = vsel %vm498_vm10, %v501_v13, %v504_v27  ;;  %v579_v15 = vsub.s32 32, %v578_v34  ;;  %v580_v62 = vshll.u32 %v571_v35, %v578_v34  ;;  %v583_v5 = vsub.s32 4294967266, %v578_v34 }
  0xb0   :  { %v506_v58 = vsel %vm496_vm9, nan, %v505_v32  ;;  %v924_v54 = vsel %vm917_vm12, %v920_v55, %v923_v29  ;;  %v165_v33 = vmul.f32 -2.0, %v161_v24 }
  0xb1   :  { %v612_v30 = vmul.f32 %v506_v58, %v186_v21  ;;  %v581_v4 = vshrl.u32 %v1645_v57, %v579_v15  ;;  %v584_v52 = vadd.s32 127, %v583_v5  ;;  %v925_v23 = vsel %vm496_vm9, nan, %v924_v54 }
  0xb2   :  { %v1032_v63 = vmul.f32 %v925_v23, %v186_v21  ;;  %v593_v57 = vsub.s32 4, %v1666_v53  ;;  %1167 = vrsqrt.f32 %v165_v33  ;;  %vm189_vm0 = vcmp.eq.f32.partialorder %v165_v33, inf }
  0xb3   :  { %v1044_v12 = vmul.f32 0.05, %v612_v30  ;;  %v582_v31 = vor.u32 %v581_v4, %v580_v62  ;;  %v585_v25 = vshll.u32 %v584_v52, 23  ;;  %vm191_vm1 = vcmp.eq.f32.partialorder %v165_v33, 0.0 }
  0xb4   :  { %v1048_v6 = vmul.f32 0.05, %v1032_v63  ;;  %v594_v18 = vsel %vm509_vm14, %v593_v57, %v1666_v53  ;;  %v192_v26 = vand.u32 2147483648, %v165_v33 }
  0xb5   :  { %v1052_v16 = vadd.f32 %v1044_v12, %v1036_v19  ;;  %v586_v47 = vor.u32 4788187, %v585_v25  ;;  %v589_v51 = vcvt.s32.f32 %v582_v31  ;;  %v596_v59 = vsel %vm508_vm15, 0, %v594_v18 }
  0xb6   :  { %v1056_v36 = vadd.f32 %v1048_v6, %v1040_v7  ;;  %v1019_v44 = vadd.s32 3, %v596_v59  ;;  %v600_v11 = vand.u32 3, %v596_v59 }
  0xb7   :  { %1060 = vst [vmem:[#allocation6 + $0x10] sm:$0xff] %v1052_v16  ;;  %v587_v37 = vand.u32 2147483647, %v586_v47 }
  0xb8   :  { %1064 = vst [vmem:[#allocation6 + $0x30] sm:$0xff] %v1056_v36  ;;  %v1020_v46 = vand.u32 3, %v1019_v44  ;;  %vm605_vm2 = vcmp.eq.s32.totalorder %v600_v11, 2  ;;  %vm602_vm3 = vcmp.eq.s32.totalorder %v600_v11, 0  ;;  %vm601_vm5 = vcmp.lt.s32.totalorder %v600_v11, 2 }
  0xb9   :  { %v590_v49 = vmul.f32 %v589_v51, %v587_v37 }
  0xba   :  { %vm1025_vm13 = vcmp.eq.s32.totalorder %v1020_v46, 2  ;;  %vm1022_vm4 = vcmp.eq.s32.totalorder %v1020_v46, 0  ;;  %vm1021_vm6 = vcmp.lt.s32.totalorder %v1020_v46, 2 }
  0xbb   :  { %v591_v40 = vxor.u32 2147483648, %v590_v49 }
  0xbc   :  { %v1168_v39 = vpop.eup %1167 }
  0xbd   :  { %v592_v1 = vsel %vm509_vm14, %v591_v40, %v590_v49  ;;  %v188_v3 = vmul.f32 %v1168_v39, %v165_v33 }
  0xbe   :  { %v595_v42 = vsel %vm508_vm15, %v1370_v56, %v592_v1 }
  0xbf   :  { %1169 = vcosq.f32 %v595_v42  ;;  %v190_v50 = vsel %vm189_vm0, %v165_v33, %v188_v3 }
  0xc0   :  { %1171 = vsinq.f32 %v595_v42  ;;  %v193_v20 = vsel %vm191_vm1, %v192_v26, %v190_v50 }
  0xc9   :  { %v1170_v43 = vpop.eup %1169 }
  0xca   :  { %v1172_v17 = vpop.eup %1171  ;;  %v606_v53 = vxor.u32 2147483648, %v1170_v43 }
  0xcb   :  { %v603_v41 = vxor.u32 2147483648, %v1172_v17 }
  0xcc   :  { %v607_v35 = vsel %vm605_vm2, %v606_v53, %v1172_v17  ;;  %v1027_v8 = vsel %vm1025_vm13, %v606_v53, %v1172_v17 }
  0xcd   :  { %v604_v10 = vsel %vm602_vm3, %v1170_v43, %v603_v41  ;;  %v1024_v28 = vsel %vm1022_vm4, %v1170_v43, %v603_v41 }
  0xce   :  { %v608_v14 = vsel %vm601_vm5, %v604_v10, %v607_v35  ;;  %v1028_v48 = vsel %vm1021_vm6, %v1024_v28, %v1027_v8 }
  0xcf   :  { %v609_v60 = vsel %vm599_vm7, nan, %v608_v14  ;;  %v1029_v0 = vsel %vm599_vm7, nan, %v1028_v48 }
  0xd0   :  { %v613_v61 = vmul.f32 %v609_v60, %v193_v20  ;;  %v1033_v45 = vmul.f32 %v1029_v0, %v193_v20 }
  0xd2   :  { %v1045_v2 = vmul.f32 0.05, %v613_v61  ;;  %v1049_v38 = vmul.f32 0.05, %v1033_v45 }
  0xd4   :  { %v1053_v27 = vadd.f32 %v1045_v2, %v1037_v9  ;;  %v1057_v29 = vadd.f32 %v1049_v38, %v1041_v22 }
  0xd6   :  { %1061 = vst [vmem:[#allocation6 + $0x18] sm:$0xff] %v1053_v27  ;;  %1065 = vst [vmem:[#allocation6 + $0x38] sm:$0xff] %v1057_v29 }
  0xd7   :  { %1206 = shalt.err (!%p1203_p12)
}
  0xd8   :  { %s1207_s8 = scalar_lea.hbm %s1704_s2, 1024 }
  0xd9   :  { %p1208_p13 = scmp.ne.s32.totalorder %s1704_s2, %s1207_s8  ;;  %p1211_p0 = scmp.lt.u32.totalorder %s1207_s8, %s1704_s2 }
  0xdb   :  { %p1213_p1 = pnand %p1211_p0, %p1208_p13 }
  0xdd   :  { %1216 = shalt.err (!%p1213_p1)
}
  0xde   :  { %1075 = dma.vmem_to_hbm [thread:$0]  %s1073_s4, 1024, %s1704_s2, [#allocation5]  }
  0xdf   :  { %1219 = dma.done.wait [#allocation5], 1024  }
  0xe0   :  { %1220 = vsyncadd [#allocation5], 4294966272 }
  0xe1   :  { %1079 = vsyncpa [#allocation4], 1 }
  0xe2   :  { %1080 = vsyncpa [#allocation5], 1 }

</bundles_post_ra>
